<compile_context>
chip_gen: v5e
topology: v5e:2x2
jax: 0.10.0
libtpu: 0.0.40
codegen_flags: <defaults>
</compile_context>

<pallas_src>
import functools

import jax
import jax.numpy as jnp
import numpy as np
from jax.experimental import pallas as pl
from jax.experimental.pallas import tpu as pltpu


# --------------------------------------------------------------------------------------
# Filter / padding helpers (trace-time constants, mirrors the PyTorch constructor)
# --------------------------------------------------------------------------------------
_BINOMIAL = {
    1: [1.0],
    2: [1.0, 1.0],
    3: [1.0, 2.0, 1.0],
    4: [1.0, 3.0, 3.0, 1.0],
    5: [1.0, 4.0, 6.0, 4.0, 1.0],
    6: [1.0, 5.0, 10.0, 10.0, 5.0, 1.0],
    7: [1.0, 6.0, 15.0, 20.0, 15.0, 6.0, 1.0],
}

_PAD_MODE = {
    "reflect": "reflect",
    "refl": "reflect",
    "replicate": "edge",
    "repl": "edge",
    "zero": "constant",
}


def _filter_2d(filt_size):
    a = np.asarray(_BINOMIAL[filt_size], dtype=np.float64)
    f = np.outer(a, a)
    return f / f.sum()


def _pad_hw(x, p0, p1, mode):
    pads = ((0, 0), (0, 0), (p0, p1), (p0, p1))
    if mode == "constant":
        return jnp.pad(x, pads)
    return jnp.pad(x, pads, mode=mode)


# --------------------------------------------------------------------------------------
# Pallas kernel: polyphase accumulation of the F x F blur taps
# --------------------------------------------------------------------------------------
def _make_blur_kernel(taps, Ho, Wo):
    """taps: tuple of (row_parity, col_parity, row_phase_offset, col_phase_offset, coeff)."""

    def kernel(x00_ref, x01_ref, x10_ref, x11_ref, o_ref):
        refs = (x00_ref, x01_ref, x10_ref, x11_ref)
        acc = None
        # Static Python loop -> fully unrolled at trace time (F*F <= 49 vector FMAs).
        for pa, pb, a, b, coef in taps:
            r = refs[pa * 2 + pb]
            tap = r[:, a:a + Ho, b:b + Wo].astype(jnp.float32) * coef
            acc = tap if acc is None else acc + tap
        o_ref[...] = acc.astype(o_ref.dtype)

    return kernel


# --------------------------------------------------------------------------------------
# Public op: BlurPool forward
# --------------------------------------------------------------------------------------
def blurpool(x, *, pad_type="reflect", filt_size=4, stride=2, pad_off=0,
             max_vmem_tile_bytes=6 * 1024 * 1024):
    """x: (N, C, H, W) float array (PyTorch NCHW convention)."""
    N, C, H, W = x.shape
    mode = _PAD_MODE[pad_type]
    p0 = (filt_size - 1) // 2 + pad_off
    p1 = int(np.ceil((filt_size - 1) / 2.0)) + pad_off

    if filt_size == 1:
        # Pure subsample -- no arithmetic to fuse into a kernel.
        # TODO(synk): trivial path kept in plain JAX (matches module's early-return branch).
        if pad_off == 0:
            return x[:, :, ::stride, ::stride]
        return _pad_hw(x, p0, p1, mode)[:, :, ::stride, ::stride]

    assert stride == 2, "TODO(synk): polyphase kernel implemented for the module default stride=2"

    x = x.astype(jnp.float32)
    xp = _pad_hw(x, p0, p1, mode)                       # (N, C, Hp, Wp)
    Hp, Wp = H + p0 + p1, W + p0 + p1
    Ho = (Hp - filt_size) // 2 + 1
    Wo = (Wp - filt_size) // 2 + 1

    # Trim to exactly the region the strided conv reads, then round up to even extents so the
    # 4 polyphase components have identical shapes (the extra row/col is never read).
    needH = 2 * (Ho - 1) + filt_size
    needW = 2 * (Wo - 1) + filt_size
    xp = xp[:, :, :needH, :needW]
    eh, ew = needH % 2, needW % 2
    if eh or ew:
        xp = jnp.pad(xp, ((0, 0), (0, 0), (0, eh), (0, ew)))
    Hext = (needH + eh) // 2
    Wext = (needW + ew) // 2

    NC = N * C
    # Polyphase split: a single reshape view of the padded input (no data duplication).
    ph = xp.reshape(NC, Hext, 2, Wext, 2)
    phases = [ph[:, :, pa, :, pb] for pa in (0, 1) for pb in (0, 1)]   # 4 x (NC, Hext, Wext)

    # Compile-time filter taps (same filter for every channel, per the module).
    f2 = _filter_2d(filt_size)
    taps = tuple(
        (di % 2, dj % 2, di // 2, dj // 2, float(f2[di, dj]))
        for di in range(filt_size) for dj in range(filt_size)
    )

    # Plane-tile size from a VMEM budget (double-buffered in/out), sized to fit v5e's 16 MiB
    # default scoped VMEM and v7x's 64 MiB physical VMEM.
    bytes_per_plane = 4 * (4 * Hext * Wext + Ho * Wo)        # f32 phases + output
    tb = max(1, int(max_vmem_tile_bytes // max(1, 2 * bytes_per_plane)))
    tb = min(tb, NC)
    while NC % tb:                                           # full blocks only
        tb -= 1

    kernel = _make_blur_kernel(taps, Ho, Wo)
    phase_spec = pl.BlockSpec((tb, Hext, Wext), lambda i: (i, 0, 0))
    out = pl.pallas_call(
        kernel,
        out_shape=jax.ShapeDtypeStruct((NC, Ho, Wo), jnp.float32),
        grid=(NC // tb,),
        in_specs=[phase_spec] * 4,
        out_specs=pl.BlockSpec((tb, Ho, Wo), lambda i: (i, 0, 0)),
        compiler_params=pltpu.CompilerParams(
            dimension_semantics=("parallel",),
            vmem_limit_bytes=32 * 1024 * 1024,
        ),
    )(*phases)
    return out.reshape(N, C, Ho, Wo)


# --------------------------------------------------------------------------------------
# Pure-JAX reference (XLA depthwise conv) for correctness checking
# --------------------------------------------------------------------------------------
def blurpool_ref(x, *, pad_type="reflect", filt_size=4, stride=2, pad_off=0):
    N, C, H, W = x.shape
    mode = _PAD_MODE[pad_type]
    p0 = (filt_size - 1) // 2 + pad_off
    p1 = int(np.ceil((filt_size - 1) / 2.0)) + pad_off
    if filt_size == 1:
        if pad_off == 0:
            return x[:, :, ::stride, ::stride]
        return _pad_hw(x, p0, p1, mode)[:, :, ::stride, ::stride]
    xp = _pad_hw(x.astype(jnp.float32), p0, p1, mode)
    f2 = jnp.asarray(_filter_2d(filt_size), jnp.float32)
    filt = jnp.broadcast_to(f2[None, None], (C, 1, filt_size, filt_size))
    return jax.lax.conv_general_dilated(
        xp, filt, window_strides=(stride, stride), padding="VALID",
        dimension_numbers=("NCHW", "OIHW", "NCHW"), feature_group_count=C)


# --------------------------------------------------------------------------------------
if __name__ == "__main__":
    key = jax.random.PRNGKey(0)
    N, C, H, W = 2, 4, 16, 16
    x = jax.random.normal(key, (N, C, H, W), jnp.float32)   # NCHW, like PyTorch

    fwd = jax.jit(functools.partial(blurpool, pad_type="reflect", filt_size=4, stride=2))
    y = fwd(x)
    jax.block_until_ready(y)

    assert y.shape == (N, C, H // 2, W // 2), y.shape

    y_ref = blurpool_ref(x, pad_type="reflect", filt_size=4, stride=2)
    np.testing.assert_allclose(np.asarray(y), np.asarray(y_ref), rtol=1e-5, atol=1e-5)

    print("KERNEL_OK")
</pallas_src>

<mosaic_0001>
module attributes {stable_mosaic.version = 11 : i64} {
  func.func @kernel(%arg0: i32, %arg1: memref<8x9x9xf32, #tpu.memory_space<vmem>>, %arg2: memref<8x9x9xf32, #tpu.memory_space<vmem>>, %arg3: memref<8x9x9xf32, #tpu.memory_space<vmem>>, %arg4: memref<8x9x9xf32, #tpu.memory_space<vmem>>, %arg5: memref<8x8x8xf32, #tpu.memory_space<vmem>>) attributes {dimension_semantics = [#tpu.dimension_semantics<parallel>], iteration_bounds = array<i64: 1>, scalar_prefetch = 0 : i64, scratch_operands = 0 : i64, tpu.core_type = #tpu.core_type<tc>, window_params = [{transform_indices = @transform_0, window_bounds = array<i64: 8, 9, 9>}, {transform_indices = @transform_1, window_bounds = array<i64: 8, 9, 9>}, {transform_indices = @transform_2, window_bounds = array<i64: 8, 9, 9>}, {transform_indices = @transform_3, window_bounds = array<i64: 8, 9, 9>}, {transform_indices = @transform_4, window_bounds = array<i64: 8, 8, 8>}]} {
    %c0 = arith.constant 0 : index
    %c0_0 = arith.constant 0 : index
    %c0_1 = arith.constant 0 : index
    %0 = vector.load %arg1[%c0, %c0_0, %c0_1] : memref<8x9x9xf32, #tpu.memory_space<vmem>>, vector<8x8x8xf32>
    %cst = arith.constant 1.562500e-02 : f32
    %1 = vector.broadcast %cst : f32 to vector<8x8x8xf32>
    %2 = arith.mulf %0, %1 : vector<8x8x8xf32>
    %c0_2 = arith.constant 0 : index
    %c0_3 = arith.constant 0 : index
    %c0_4 = arith.constant 0 : index
    %3 = vector.load %arg2[%c0_2, %c0_3, %c0_4] : memref<8x9x9xf32, #tpu.memory_space<vmem>>, vector<8x8x8xf32>
    %cst_5 = arith.constant 4.687500e-02 : f32
    %4 = vector.broadcast %cst_5 : f32 to vector<8x8x8xf32>
    %5 = arith.mulf %3, %4 : vector<8x8x8xf32>
    %6 = arith.addf %2, %5 : vector<8x8x8xf32>
    %c0_6 = arith.constant 0 : index
    %c0_7 = arith.constant 0 : index
    %c1 = arith.constant 1 : index
    %7 = vector.load %arg1[%c0_6, %c0_7, %c1] : memref<8x9x9xf32, #tpu.memory_space<vmem>>, vector<8x8x8xf32>
    %cst_8 = arith.constant 4.687500e-02 : f32
    %8 = vector.broadcast %cst_8 : f32 to vector<8x8x8xf32>
    %9 = arith.mulf %7, %8 : vector<8x8x8xf32>
    %10 = arith.addf %6, %9 : vector<8x8x8xf32>
    %c0_9 = arith.constant 0 : index
    %c0_10 = arith.constant 0 : index
    %c1_11 = arith.constant 1 : index
    %11 = vector.load %arg2[%c0_9, %c0_10, %c1_11] : memref<8x9x9xf32, #tpu.memory_space<vmem>>, vector<8x8x8xf32>
    %cst_12 = arith.constant 1.562500e-02 : f32
    %12 = vector.broadcast %cst_12 : f32 to vector<8x8x8xf32>
    %13 = arith.mulf %11, %12 : vector<8x8x8xf32>
    %14 = arith.addf %10, %13 : vector<8x8x8xf32>
    %c0_13 = arith.constant 0 : index
    %c0_14 = arith.constant 0 : index
    %c0_15 = arith.constant 0 : index
    %15 = vector.load %arg3[%c0_13, %c0_14, %c0_15] : memref<8x9x9xf32, #tpu.memory_space<vmem>>, vector<8x8x8xf32>
    %cst_16 = arith.constant 4.687500e-02 : f32
    %16 = vector.broadcast %cst_16 : f32 to vector<8x8x8xf32>
    %17 = arith.mulf %15, %16 : vector<8x8x8xf32>
    %18 = arith.addf %14, %17 : vector<8x8x8xf32>
    %c0_17 = arith.constant 0 : index
    %c0_18 = arith.constant 0 : index
    %c0_19 = arith.constant 0 : index
    %19 = vector.load %arg4[%c0_17, %c0_18, %c0_19] : memref<8x9x9xf32, #tpu.memory_space<vmem>>, vector<8x8x8xf32>
    %cst_20 = arith.constant 1.406250e-01 : f32
    %20 = vector.broadcast %cst_20 : f32 to vector<8x8x8xf32>
    %21 = arith.mulf %19, %20 : vector<8x8x8xf32>
    %22 = arith.addf %18, %21 : vector<8x8x8xf32>
    %c0_21 = arith.constant 0 : index
    %c0_22 = arith.constant 0 : index
    %c1_23 = arith.constant 1 : index
    %23 = vector.load %arg3[%c0_21, %c0_22, %c1_23] : memref<8x9x9xf32, #tpu.memory_space<vmem>>, vector<8x8x8xf32>
    %cst_24 = arith.constant 1.406250e-01 : f32
    %24 = vector.broadcast %cst_24 : f32 to vector<8x8x8xf32>
    %25 = arith.mulf %23, %24 : vector<8x8x8xf32>
    %26 = arith.addf %22, %25 : vector<8x8x8xf32>
    %c0_25 = arith.constant 0 : index
    %c0_26 = arith.constant 0 : index
    %c1_27 = arith.constant 1 : index
    %27 = vector.load %arg4[%c0_25, %c0_26, %c1_27] : memref<8x9x9xf32, #tpu.memory_space<vmem>>, vector<8x8x8xf32>
    %cst_28 = arith.constant 4.687500e-02 : f32
    %28 = vector.broadcast %cst_28 : f32 to vector<8x8x8xf32>
    %29 = arith.mulf %27, %28 : vector<8x8x8xf32>
    %30 = arith.addf %26, %29 : vector<8x8x8xf32>
    %c0_29 = arith.constant 0 : index
    %c1_30 = arith.constant 1 : index
    %c0_31 = arith.constant 0 : index
    %31 = vector.load %arg1[%c0_29, %c1_30, %c0_31] : memref<8x9x9xf32, #tpu.memory_space<vmem>>, vector<8x8x8xf32>
    %cst_32 = arith.constant 4.687500e-02 : f32
    %32 = vector.broadcast %cst_32 : f32 to vector<8x8x8xf32>
    %33 = arith.mulf %31, %32 : vector<8x8x8xf32>
    %34 = arith.addf %30, %33 : vector<8x8x8xf32>
    %c0_33 = arith.constant 0 : index
    %c1_34 = arith.constant 1 : index
    %c0_35 = arith.constant 0 : index
    %35 = vector.load %arg2[%c0_33, %c1_34, %c0_35] : memref<8x9x9xf32, #tpu.memory_space<vmem>>, vector<8x8x8xf32>
    %cst_36 = arith.constant 1.406250e-01 : f32
    %36 = vector.broadcast %cst_36 : f32 to vector<8x8x8xf32>
    %37 = arith.mulf %35, %36 : vector<8x8x8xf32>
    %38 = arith.addf %34, %37 : vector<8x8x8xf32>
    %c0_37 = arith.constant 0 : index
    %c1_38 = arith.constant 1 : index
    %c1_39 = arith.constant 1 : index
    %39 = vector.load %arg1[%c0_37, %c1_38, %c1_39] : memref<8x9x9xf32, #tpu.memory_space<vmem>>, vector<8x8x8xf32>
    %cst_40 = arith.constant 1.406250e-01 : f32
    %40 = vector.broadcast %cst_40 : f32 to vector<8x8x8xf32>
    %41 = arith.mulf %39, %40 : vector<8x8x8xf32>
    %42 = arith.addf %38, %41 : vector<8x8x8xf32>
    %c0_41 = arith.constant 0 : index
    %c1_42 = arith.constant 1 : index
    %c1_43 = arith.constant 1 : index
    %43 = vector.load %arg2[%c0_41, %c1_42, %c1_43] : memref<8x9x9xf32, #tpu.memory_space<vmem>>, vector<8x8x8xf32>
    %cst_44 = arith.constant 4.687500e-02 : f32
    %44 = vector.broadcast %cst_44 : f32 to vector<8x8x8xf32>
    %45 = arith.mulf %43, %44 : vector<8x8x8xf32>
    %46 = arith.addf %42, %45 : vector<8x8x8xf32>
    %c0_45 = arith.constant 0 : index
    %c1_46 = arith.constant 1 : index
    %c0_47 = arith.constant 0 : index
    %47 = vector.load %arg3[%c0_45, %c1_46, %c0_47] : memref<8x9x9xf32, #tpu.memory_space<vmem>>, vector<8x8x8xf32>
    %cst_48 = arith.constant 1.562500e-02 : f32
    %48 = vector.broadcast %cst_48 : f32 to vector<8x8x8xf32>
    %49 = arith.mulf %47, %48 : vector<8x8x8xf32>
    %50 = arith.addf %46, %49 : vector<8x8x8xf32>
    %c0_49 = arith.constant 0 : index
    %c1_50 = arith.constant 1 : index
    %c0_51 = arith.constant 0 : index
    %51 = vector.load %arg4[%c0_49, %c1_50, %c0_51] : memref<8x9x9xf32, #tpu.memory_space<vmem>>, vector<8x8x8xf32>
    %cst_52 = arith.constant 4.687500e-02 : f32
    %52 = vector.broadcast %cst_52 : f32 to vector<8x8x8xf32>
    %53 = arith.mulf %51, %52 : vector<8x8x8xf32>
    %54 = arith.addf %50, %53 : vector<8x8x8xf32>
    %c0_53 = arith.constant 0 : index
    %c1_54 = arith.constant 1 : index
    %c1_55 = arith.constant 1 : index
    %55 = vector.load %arg3[%c0_53, %c1_54, %c1_55] : memref<8x9x9xf32, #tpu.memory_space<vmem>>, vector<8x8x8xf32>
    %cst_56 = arith.constant 4.687500e-02 : f32
    %56 = vector.broadcast %cst_56 : f32 to vector<8x8x8xf32>
    %57 = arith.mulf %55, %56 : vector<8x8x8xf32>
    %58 = arith.addf %54, %57 : vector<8x8x8xf32>
    %c0_57 = arith.constant 0 : index
    %c1_58 = arith.constant 1 : index
    %c1_59 = arith.constant 1 : index
    %59 = vector.load %arg4[%c0_57, %c1_58, %c1_59] : memref<8x9x9xf32, #tpu.memory_space<vmem>>, vector<8x8x8xf32>
    %cst_60 = arith.constant 1.562500e-02 : f32
    %60 = vector.broadcast %cst_60 : f32 to vector<8x8x8xf32>
    %61 = arith.mulf %59, %60 : vector<8x8x8xf32>
    %62 = arith.addf %58, %61 : vector<8x8x8xf32>
    %c0_61 = arith.constant 0 : index
    %c0_62 = arith.constant 0 : index
    %c0_63 = arith.constant 0 : index
    %63 = vector.load %arg5[%c0_61, %c0_62, %c0_63] : memref<8x8x8xf32, #tpu.memory_space<vmem>>, vector<8x8x8xf32>
    tpu.vector_store %arg5[%c0_61, %c0_62, %c0_63], %62 {strides = array<i32>} : memref<8x8x8xf32, #tpu.memory_space<vmem>>, vector<8x8x8xf32>,
    return
  }
  func.func @transform_0(%arg0: i32) -> (i32, i32, i32) {
    %c0_i32 = arith.constant 0 : i32
    %c0_i32_0 = arith.constant 0 : i32
    %c0_i32_1 = arith.constant 0 : i32
    return %arg0, %c0_i32, %c0_i32_0 : i32, i32, i32
  }
  func.func @transform_1(%arg0: i32) -> (i32, i32, i32) {
    %c0_i32 = arith.constant 0 : i32
    %c0_i32_0 = arith.constant 0 : i32
    %c0_i32_1 = arith.constant 0 : i32
    return %arg0, %c0_i32, %c0_i32_0 : i32, i32, i32
  }
  func.func @transform_2(%arg0: i32) -> (i32, i32, i32) {
    %c0_i32 = arith.constant 0 : i32
    %c0_i32_0 = arith.constant 0 : i32
    %c0_i32_1 = arith.constant 0 : i32
    return %arg0, %c0_i32, %c0_i32_0 : i32, i32, i32
  }
  func.func @transform_3(%arg0: i32) -> (i32, i32, i32) {
    %c0_i32 = arith.constant 0 : i32
    %c0_i32_0 = arith.constant 0 : i32
    %c0_i32_1 = arith.constant 0 : i32
    return %arg0, %c0_i32, %c0_i32_0 : i32, i32, i32
  }
  func.func @transform_4(%arg0: i32) -> (i32, i32, i32) {
    %c0_i32 = arith.constant 0 : i32
    %c0_i32_0 = arith.constant 0 : i32
    %c0_i32_1 = arith.constant 0 : i32
    return %arg0, %c0_i32, %c0_i32_0 : i32, i32, i32
  }
}

</mosaic_0001>

<bundles_post_ra>
// kernel: blurpool.1
= control target key start
LH: loop header
LB: loop body
LE: loop exit
PB: predicated region body
PF: predicated region fallthrough
CT: control target
= control target key end

     0   :  { %s643_s21 = smov 127   ;;  %s1257_s0 = inlined_call_operand.vmem [shape: f32[8,9,9], index: 0, kind: input, shape index: {}]   ;;  %s1258_s1 = inlined_call_operand.vmem [shape: f32[8,9,9], index: 1, kind: input, shape index: {}]   ;;  %s1259_s2 = inlined_call_operand.vmem [shape: f32[8,9,9], index: 2, kind: input, shape index: {}]   ;;  %s1260_s3 = inlined_call_operand.vmem [shape: f32[8,9,9], index: 3, kind: input, shape index: {}]   ;;  %s1261_s4 = inlined_call_operand.hbm [shape: f32[8,8,8], index: 4, kind: output, shape index: {}]  }
   0x1   :  { %v675_v0 = vld [vmem:[%s1257_s0 + $0x20] sm:$0xff]  ;;  %v695_v6 = vld [vmem:[%s1257_s0 + $0x30] sm:$0xff] }
   0x2   :  { %v680_v1 = vld [vmem:[%s1257_s0] sm:$0xff]  ;;  %v60_v2 = vmul.f32 0.046875, %v675_v0  ;;  %v700_v7 = vld [vmem:[%s1257_s0 + $0x10] sm:$0xff] }
   0x3   :  { %v58_v3 = vmul.f32 0.046875, %v680_v1  ;;  %v687_v4 = vld [vmem:[%s1257_s0 + $0x40] sm:$0xff]  ;;  %v706_v8 = vld [vmem:[%s1257_s0 + $0x50] sm:$0xff] }
   0x4   :  { %v62_v5 = vmul.f32 0.046875, %v687_v4  ;;  %78 = vrot.lane.b32.xlu1 %v60_v2, %s643_s21 }
   0x5   :  { %74 = vrot.lane.b32.xlu0 %v58_v3, %s643_s21 }
   0x6   :  { %82 = vrot.lane.b32.xlu2 %v62_v5, %s643_s21 }
   0x7   :  { %9 = vsyncpa [#allocation3], 0  ;;  %v61_v9 = vmul.f32 0.046875, %v695_v6  ;;  %v59_v10 = vmul.f32 0.046875, %v700_v7  ;;  %v63_v11 = vmul.f32 0.046875, %v706_v8  ;;  %v716_v12 = vld [vmem:[%s1257_s0 + $0x70] sm:$0xff] }
   0x8   :  { %v721_v13 = vld [vmem:[%s1257_s0 + $0x60] sm:$0xff]  ;;  %v65_v15 = vmul.f32 0.046875, %v716_v12  ;;  %v742_v19 = vld [vmem:[%s1258_s1 + $0x10] sm:$0xff]  ;;  %v30_v54 = vmul.f32 0.015625, %v687_v4  ;;  %vm586_vm0 = vcmask 64512   ;;  %s601_s15 = sshll.u32 %s1261_s4, 4  ;;  %s602_s15 = int_to_ptr.hbm [resolvable:$true] %s601_s15 }
   0x9   :  { %v727_v14 = vld [vmem:[%s1258_s1] sm:$0xff]  ;;  %v64_v16 = vmul.f32 0.046875, %v721_v13  ;;  %v748_v20 = vld [vmem:[%s1258_s1 + $0x30] sm:$0xff]  ;;  %v107_v22 = vmul.f32 0.015625, %v742_v19  ;;  %s645_s16 = smov 128   ;;  %s646_s17 = smov 8  }
   0xa   :  { %v106_v17 = vmul.f32 0.015625, %v727_v14  ;;  %v737_v18 = vld [vmem:[%s1258_s1 + $0x20] sm:$0xff]  ;;  %v109_v23 = vmul.f32 0.015625, %v748_v20  ;;  %v758_v24 = vld [vmem:[%s1258_s1 + $0x50] sm:$0xff] }
   0xb   :  { %v108_v21 = vmul.f32 0.015625, %v737_v18  ;;  %v38_v25 = vld [vmem:[%s1258_s1 + $0x40] sm:$0xff]  ;;  %v111_v27 = vmul.f32 0.015625, %v758_v24  ;;  %v781_v31 = vld [vmem:[%s1258_s1 + $0x70] sm:$0xff] }
   0xc   :  { %80 = vrot.lane.b32.xlu1 %v61_v9, %s643_s21  ;;  %v767_v26 = vld [vmem:[%s1258_s1 + $0x60] sm:$0xff]  ;;  %v110_v28 = vmul.f32 0.015625, %v38_v25  ;;  %v787_v32 = vld [vmem:[%s1259_s2 + $0x10] sm:$0xff]  ;;  %v113_v34 = vmul.f32 0.015625, %v781_v31  ;;  %v46_v55 = vmul.f32 0.046875, %v38_v25 }
   0xd   :  { %76 = vrot.lane.b32.xlu0 %v59_v10, %s643_s21  ;;  %v112_v29 = vmul.f32 0.015625, %v767_v26  ;;  %v776_v30 = vld [vmem:[%s1259_s2] sm:$0xff]  ;;  %v203_v35 = vmul.f32 0.140625, %v787_v32  ;;  %v797_v36 = vld [vmem:[%s1259_s2 + $0x30] sm:$0xff] }
   0xe   :  { %84 = vrot.lane.b32.xlu2 %v63_v11, %s643_s21  ;;  %v202_v33 = vmul.f32 0.140625, %v776_v30  ;;  %v802_v37 = vld [vmem:[%s1259_s2 + $0x20] sm:$0xff]  ;;  %v205_v39 = vmul.f32 0.140625, %v797_v36  ;;  %v823_v43 = vld [vmem:[%s1259_s2 + $0x50] sm:$0xff]  ;;  %v54_v59 = vadd.f32 %v46_v55, %v30_v54  ;;  %v28_v54 = vmul.f32 0.015625, %v675_v0 }
   0xf   :  { %v808_v38 = vld [vmem:[%s1259_s2 + $0x40] sm:$0xff]  ;;  %v204_v40 = vmul.f32 0.140625, %v802_v37  ;;  %v829_v44 = vld [vmem:[%s1259_s2 + $0x70] sm:$0xff]  ;;  %v207_v46 = vmul.f32 0.140625, %v823_v43  ;;  %v26_v55 = vmul.f32 0.015625, %v680_v1 }
  0x10   :  { %v206_v41 = vmul.f32 0.140625, %v808_v38  ;;  %v818_v42 = vld [vmem:[%s1259_s2 + $0x60] sm:$0xff]  ;;  %v209_v47 = vmul.f32 0.140625, %v829_v44  ;;  %v839_v48 = vld [vmem:[%s1260_s3 + $0x10] sm:$0xff] }
  0x11   :  { %v208_v45 = vmul.f32 0.140625, %v818_v42  ;;  %v844_v49 = vld [vmem:[%s1260_s3] sm:$0xff]  ;;  %v251_v51 = vmul.f32 0.046875, %v839_v48  ;;  %v866_v57 = vld [vmem:[%s1260_s3 + $0x30] sm:$0xff] }
  0x12   :  { %v850_v50 = vld [vmem:[%s1260_s3 + $0x20] sm:$0xff]  ;;  %v250_v52 = vmul.f32 0.046875, %v844_v49  ;;  %v872_v58 = vld [vmem:[%s1260_s3 + $0x50] sm:$0xff]  ;;  %v253_v61 = vmul.f32 0.046875, %v866_v57 }
  0x13   :  { %v252_v53 = vmul.f32 0.046875, %v850_v50  ;;  %v861_v56 = vld [vmem:[%s1260_s3 + $0x40] sm:$0xff]  ;;  %v255_v62 = vmul.f32 0.046875, %v872_v58  ;;  %v882_v63 = vld [vmem:[%s1260_s3 + $0x70] sm:$0xff] }
  0x14   :  { %88 = vrot.lane.b32.xlu1 %v65_v15, %s643_s21  ;;  %v254_v60 = vmul.f32 0.046875, %v861_v56  ;;  %v887_v2 = vld [vmem:[%s1260_s3 + $0x60] sm:$0xff]  ;;  %v257_v4 = vmul.f32 0.046875, %v882_v63  ;;  %v908_v11 = vld [vmem:[%s1257_s0 + $0x11] sm:$0xff] }
  0x15   :  { %86 = vrot.lane.b32.xlu0 %v64_v16, %s643_s21  ;;  %v893_v3 = vld [vmem:[%s1257_s0 + $0x1] sm:$0xff]  ;;  %v256_v5 = vmul.f32 0.046875, %v887_v2  ;;  %v914_v15 = vld [vmem:[%s1257_s0 + $0x31] sm:$0xff] }
  0x16   :  { %122 = vrot.lane.b32.xlu2 %v106_v17, %s643_s21  ;;  %v346_v9 = vmul.f32 0.140625, %v893_v3  ;;  %v903_v10 = vld [vmem:[%s1257_s0 + $0x21] sm:$0xff]  ;;  %v347_v17 = vmul.f32 0.140625, %v908_v11  ;;  %v1000_v1 = vld [vmem:[%s1258_s1 + $0x51] sm:$0xff] }
  0x17   :  { %v348_v16 = vmul.f32 0.140625, %v903_v10  ;;  %v935_v25 = vld [vmem:[%s1257_s0 + $0x61] sm:$0xff] }
  0x18   :  { %v995_v0 = vld [vmem:[%s1258_s1 + $0x61] sm:$0xff] }
  0x1c   :  { %126 = vrot.lane.b32.xlu1 %v108_v21, %s643_s21  ;;  %v349_v21 = vmul.f32 0.140625, %v914_v15 }
  0x1d   :  { %124 = vrot.lane.b32.xlu0 %v107_v22, %s643_s21  ;;  %v924_v22 = vld [vmem:[%s1257_s0 + $0x51] sm:$0xff] }
  0x1e   :  { %128 = vrot.lane.b32.xlu2 %v109_v23, %s643_s21  ;;  %v929_v23 = vld [vmem:[%s1257_s0 + $0x41] sm:$0xff] }
  0x24   :  { %132 = vrot.lane.b32.xlu1 %v111_v27, %s643_s21 }
  0x25   :  { %130 = vrot.lane.b32.xlu0 %v110_v28, %s643_s21  ;;  %v351_v28 = vmul.f32 0.140625, %v924_v22 }
  0x26   :  { %134 = vrot.lane.b32.xlu2 %v112_v29, %s643_s21  ;;  %v350_v29 = vmul.f32 0.140625, %v929_v23 }
  0x2c   :  { %218 = vrot.lane.b32.xlu1 %v202_v33, %s643_s21 }
  0x2d   :  { %136 = vrot.lane.b32.xlu0 %v113_v34, %s643_s21  ;;  %v352_v34 = vmul.f32 0.140625, %v935_v25 }
  0x2e   :  { %220 = vrot.lane.b32.xlu2 %v203_v35, %s643_s21  ;;  %v947_v35 = vld [vmem:[%s1258_s1 + $0x1] sm:$0xff] }
  0x34   :  { %224 = vrot.lane.b32.xlu1 %v205_v39, %s643_s21  ;;  %v952_v39 = vld [vmem:[%s1257_s0 + $0x71] sm:$0xff] }
  0x35   :  { %222 = vrot.lane.b32.xlu0 %v204_v40, %s643_s21  ;;  %v958_v40 = vld [vmem:[%s1258_s1 + $0x11] sm:$0xff] }
  0x36   :  { %226 = vrot.lane.b32.xlu2 %v206_v41, %s643_s21 }
  0x3c   :  { %230 = vrot.lane.b32.xlu1 %v208_v45, %s643_s21  ;;  %v394_v45 = vmul.f32 0.046875, %v947_v35 }
  0x3d   :  { %228 = vrot.lane.b32.xlu0 %v207_v46, %s643_s21  ;;  %v353_v46 = vmul.f32 0.140625, %v952_v39 }
  0x3e   :  { %232 = vrot.lane.b32.xlu2 %v209_v47, %s643_s21  ;;  %v395_v47 = vmul.f32 0.046875, %v958_v40 }
  0x44   :  { %268 = vrot.lane.b32.xlu1 %v251_v51, %s643_s21  ;;  %v970_v51 = vld [vmem:[%s1258_s1 + $0x31] sm:$0xff] }
  0x45   :  { %266 = vrot.lane.b32.xlu0 %v250_v52, %s643_s21  ;;  %v975_v52 = vld [vmem:[%s1258_s1 + $0x21] sm:$0xff] }
  0x46   :  { %270 = vrot.lane.b32.xlu2 %v252_v53, %s643_s21  ;;  %v981_v53 = vld [vmem:[%s1258_s1 + $0x41] sm:$0xff] }
  0x4c   :  { %274 = vrot.lane.b32.xlu1 %v254_v60, %s643_s21  ;;  %v42_v60 = vmul.f32 0.046875, %v727_v14 }
  0x4d   :  { %272 = vrot.lane.b32.xlu0 %v253_v61, %s643_s21 }
  0x4e   :  { %276 = vrot.lane.b32.xlu2 %v255_v62, %s643_s21  ;;  %v397_v62 = vmul.f32 0.046875, %v970_v51 }
  0x54   :  { %280 = vrot.lane.b32.xlu1 %v257_v4, %s643_s21  ;;  %v396_v4 = vmul.f32 0.046875, %v975_v52 }
  0x55   :  { %278 = vrot.lane.b32.xlu0 %v256_v5, %s643_s21  ;;  %v398_v5 = vmul.f32 0.046875, %v981_v53 }
  0x56   :  { %362 = vrot.lane.b32.xlu2 %v346_v9, %s643_s21 }
  0x5c   :  { %366 = vrot.lane.b32.xlu1 %v348_v16, %s643_s21  ;;  %v50_v16 = vadd.f32 %v42_v60, %v26_v55  ;;  %v186_v55 = vmul.f32 0.140625, %v844_v49 }
  0x5d   :  { %364 = vrot.lane.b32.xlu0 %v347_v17, %s643_s21  ;;  %v162_v17 = vmul.f32 0.046875, %v776_v30 }
  0x5e   :  { %368 = vrot.lane.b32.xlu2 %v349_v21, %s643_s21  ;;  %v1007_v21 = vld [vmem:[%s1258_s1 + $0x71] sm:$0xff] }
  0x5f   :  { %v401_v30 = vmul.f32 0.046875, %v1007_v21 }
  0x60   :  { %v83_v27 = vpop.permute.xlu2 %82 }
  0x61   :  { %v939_v33 = vadd.f32 %v83_v27, %v54_v59  ;;  %v44_v59 = vmul.f32 0.046875, %v737_v18 }
  0x63   :  { %v52_v9 = vadd.f32 %v44_v59, %v28_v54 }
  0x64   :  { %372 = vrot.lane.b32.xlu1 %v351_v28, %s643_s21 }
  0x65   :  { %370 = vrot.lane.b32.xlu0 %v350_v29, %s643_s21  ;;  %v29_v29 = vmul.f32 0.015625, %v695_v6  ;;  %v1022_v6 = vld [vmem:[%s1259_s2 + $0x11] sm:$0xff] }
  0x66   :  { %374 = vrot.lane.b32.xlu2 %v352_v34, %s643_s21  ;;  %v45_v34 = vmul.f32 0.046875, %v748_v20  ;;  %v1027_v20 = vld [vmem:[%s1259_s2 + $0x1] sm:$0xff] }
  0x68   :  { %v960_v41 = vpop.permute.xlu2 %84  ;;  %v53_v60 = vadd.f32 %v45_v34, %v29_v29 }
  0x6c   :  { %410 = vrot.lane.b32.xlu1 %v394_v45, %s643_s21 }
  0x6d   :  { %376 = vrot.lane.b32.xlu0 %v353_v46, %s643_s21  ;;  %v400_v46 = vmul.f32 0.046875, %v995_v0 }
  0x6e   :  { %412 = vrot.lane.b32.xlu2 %v395_v47, %s643_s21  ;;  %v399_v47 = vmul.f32 0.046875, %v1000_v1 }
  0x70   :  { %v123_v61 = vpop.permute.xlu2 %122 }
  0x74   :  { %416 = vrot.lane.b32.xlu1 %v397_v62, %s643_s21 }
  0x75   :  { %414 = vrot.lane.b32.xlu0 %v396_v4, %s643_s21  ;;  %v1035_v4 = vld [vmem:[%s1259_s2 + $0x21] sm:$0xff] }
  0x76   :  { %418 = vrot.lane.b32.xlu2 %v398_v5, %s643_s21  ;;  %v79_v14 = vpop.permute.xlu1 %78  ;;  %v492_v29 = vmul.f32 0.046875, %v1035_v4 }
  0x77   :  { %v75_v18 = vpop.permute.xlu0 %74  ;;  %v1009_v27 = vadd.f32 %v79_v14, %v52_v9  ;;  %v32_v9 = vmul.f32 0.015625, %v721_v13  ;;  %v43_v13 = vmul.f32 0.046875, %v742_v19 }
  0x78   :  { %v98_v28 = vadd.f32 %v75_v18, %v50_v16  ;;  %v129_v45 = vpop.permute.xlu2 %128  ;;  %v48_v16 = vmul.f32 0.046875, %v767_v26  ;;  %v491_v18 = vmul.f32 0.046875, %v1022_v6  ;;  %v1051_v26 = vld [vmem:[%s1259_s2 + $0x41] sm:$0xff] }
  0x7a   :  { %v146_v54 = vadd.f32 %v123_v61, %v98_v28  ;;  %v56_v34 = vadd.f32 %v48_v16, %v32_v9  ;;  %v192_v16 = vmul.f32 0.140625, %v887_v2  ;;  %v1082_v2 = vld [vmem:[%s1259_s2 + $0x61] sm:$0xff] }
  0x7c   :  { %v170_v59 = vadd.f32 %v162_v17, %v146_v54  ;;  %422 = vrot.lane.b32.xlu1 %v400_v46, %s643_s21  ;;  %v490_v17 = vmul.f32 0.046875, %v1027_v20  ;;  %v27_v46 = vmul.f32 0.015625, %v700_v7  ;;  %v1062_v7 = vld [vmem:[%s1259_s2 + $0x51] sm:$0xff] }
  0x7d   :  { %420 = vrot.lane.b32.xlu0 %v399_v47, %s643_s21  ;;  %v495_v9 = vmul.f32 0.046875, %v1062_v7 }
  0x7e   :  { %424 = vrot.lane.b32.xlu2 %v401_v30, %s643_s21  ;;  %v1030_v61 = vadd.f32 %v186_v55, %v170_v59  ;;  %v81_v49 = vpop.permute.xlu1 %80  ;;  %v168_v30 = vmul.f32 0.046875, %v818_v42  ;;  %v494_v59 = vmul.f32 0.046875, %v1051_v26  ;;  %v47_v42 = vmul.f32 0.046875, %v758_v24  ;;  %v1090_v24 = vld [vmem:[%s1260_s3 + $0x1] sm:$0xff] }
  0x7f   :  { %v77_v62 = vpop.permute.xlu0 %76  ;;  %v101_v5 = vadd.f32 %v81_v49, %v53_v60  ;;  %v51_v49 = vadd.f32 %v43_v13, %v27_v46 }
  0x80   :  { %v135_v14 = vpop.permute.xlu2 %134 }
  0x81   :  { %v1041_v28 = vadd.f32 %v129_v45, %v101_v5  ;;  %v1056_v45 = vld [vmem:[%s1259_s2 + $0x31] sm:$0xff] }
  0x82   :  { %v493_v60 = vmul.f32 0.046875, %v1056_v45 }
  0x84   :  { %508 = vrot.lane.b32.xlu1 %v491_v18, %s643_s21 }
  0x85   :  { %506 = vrot.lane.b32.xlu0 %v490_v17, %s643_s21  ;;  %v31_v17 = vmul.f32 0.015625, %v706_v8 }
  0x86   :  { %510 = vrot.lane.b32.xlu2 %v492_v29, %s643_s21  ;;  %v89_v47 = vpop.permute.xlu1 %88  ;;  %v99_v29 = vadd.f32 %v77_v62, %v51_v49 }
  0x87   :  { %v87_v54 = vpop.permute.xlu0 %86 }
  0x88   :  { %v104_v19 = vadd.f32 %v87_v54, %v56_v34  ;;  %v221_v55 = vpop.permute.xlu2 %220  ;;  %v163_v34 = vmul.f32 0.046875, %v787_v32  ;;  %v187_v54 = vmul.f32 0.140625, %v839_v48  ;;  %v49_v48 = vmul.f32 0.046875, %v781_v31  ;;  %v1119_v31 = vld [vmem:[%s1260_s3 + $0x31] sm:$0xff] }
  0x8a   :  { %v152_v5 = vadd.f32 %v135_v14, %v104_v19  ;;  %v1077_v14 = vld [vmem:[%s1259_s2 + $0x71] sm:$0xff] }
  0x8c   :  { %v176_v18 = vadd.f32 %v168_v30, %v152_v5  ;;  %514 = vrot.lane.b32.xlu1 %v494_v59, %s643_s21  ;;  %v497_v30 = vmul.f32 0.046875, %v1077_v14  ;;  %v496_v59 = vmul.f32 0.046875, %v1082_v2  ;;  %v538_v5 = vmul.f32 0.015625, %v1090_v24 }
  0x8d   :  { %512 = vrot.lane.b32.xlu0 %v493_v60, %s643_s21  ;;  %v55_v60 = vadd.f32 %v47_v42, %v31_v17  ;;  %v1108_v17 = vld [vmem:[%s1260_s3 + $0x21] sm:$0xff] }
  0x8e   :  { %516 = vrot.lane.b32.xlu2 %v495_v9, %s643_s21  ;;  %v1085_v8 = vadd.f32 %v192_v16, %v176_v18  ;;  %v127_v46 = vpop.permute.xlu1 %126  ;;  %v33_v16 = vmul.f32 0.015625, %v716_v12  ;;  %v1113_v12 = vld [vmem:[%s1260_s3 + $0x11] sm:$0xff] }
  0x8f   :  { %v125_v13 = vpop.permute.xlu0 %124  ;;  %v148_v32 = vadd.f32 %v127_v46, %v1009_v27  ;;  %v103_v27 = vadd.f32 %v960_v41, %v55_v60 }
  0x90   :  { %v147_v62 = vadd.f32 %v125_v13, %v99_v29  ;;  %v227_v19 = vpop.permute.xlu2 %226  ;;  %v166_v29 = vmul.f32 0.046875, %v808_v38  ;;  %v540_v13 = vmul.f32 0.015625, %v1108_v17 }
  0x92   :  { %v171_v49 = vadd.f32 %v163_v34, %v147_v62  ;;  %v190_v34 = vmul.f32 0.140625, %v861_v56  ;;  %v539_v62 = vmul.f32 0.015625, %v1113_v12 }
  0x94   :  { %v195_v9 = vadd.f32 %v187_v54, %v171_v49  ;;  %520 = vrot.lane.b32.xlu1 %v497_v30, %s643_s21  ;;  %v57_v54 = vadd.f32 %v49_v48, %v33_v16  ;;  %v165_v49 = vmul.f32 0.046875, %v797_v36  ;;  %v1134_v16 = vld [vmem:[%s1260_s3 + $0x51] sm:$0xff] }
  0x95   :  { %518 = vrot.lane.b32.xlu0 %v496_v59, %s643_s21  ;;  %v541_v59 = vmul.f32 0.015625, %v1119_v31 }
  0x96   :  { %v1102_v18 = vadd.f32 %v221_v55, %v195_v9  ;;  %554 = vrot.lane.b32.xlu2 %v538_v5, %s643_s21  ;;  %v133_v42 = vpop.permute.xlu1 %132  ;;  %v105_v5 = vadd.f32 %v89_v47, %v57_v54  ;;  %v169_v9 = vmul.f32 0.046875, %v829_v44 }
  0x97   :  { %v131_v41 = vpop.permute.xlu0 %130  ;;  %v151_v38 = vadd.f32 %v133_v42, %v103_v27  ;;  %v1139_v27 = vld [vmem:[%s1260_s3 + $0x41] sm:$0xff]  ;;  %v543_v42 = vmul.f32 0.015625, %v1134_v16 }
  0x98   :  { %v150_v55 = vadd.f32 %v131_v41, %v939_v33  ;;  %v233_v46 = vpop.permute.xlu2 %232  ;;  %v164_v33 = vmul.f32 0.046875, %v802_v37  ;;  %v1145_v37 = vld [vmem:[%s1260_s3 + $0x61] sm:$0xff]  ;;  %v542_v41 = vmul.f32 0.015625, %v1139_v27 }
  0x9a   :  { %v174_v30 = vadd.f32 %v166_v29, %v150_v55  ;;  %v189_v55 = vmul.f32 0.140625, %v866_v57 }
  0x9c   :  { %v198_v60 = vadd.f32 %v190_v34, %v174_v30  ;;  %558 = vrot.lane.b32.xlu1 %v540_v13, %s643_s21  ;;  %v188_v34 = vmul.f32 0.140625, %v850_v50  ;;  %v173_v13 = vadd.f32 %v165_v49, %v1041_v28  ;;  %v544_v30 = vmul.f32 0.015625, %v1145_v37  ;;  %v1163_v50 = vld [vmem:[%s1260_s3 + $0x71] sm:$0xff]  ;;  %s644_s3 = smov [#allocation2]  }
  0x9d   :  { %556 = vrot.lane.b32.xlu0 %v539_v62, %s643_s21  ;;  %v172_v62 = vadd.f32 %v164_v33, %v148_v32  ;;  %v308_v33 = vmul.f32 0.046875, %v903_v10 }
  0x9e   :  { %v246_v56 = vadd.f32 %v227_v19, %v198_v60  ;;  %560 = vrot.lane.b32.xlu2 %v541_v59, %s643_s21  ;;  %v219_v36 = vpop.permute.xlu1 %218  ;;  %v193_v19 = vmul.f32 0.140625, %v882_v63  ;;  %v167_v63 = vmul.f32 0.046875, %v823_v43  ;;  %v197_v60 = vadd.f32 %v189_v55, %v173_v13 }
  0x9f   :  { %v137_v48 = vpop.permute.xlu0 %136  ;;  %v1148_v44 = vadd.f32 %v219_v36, %v1030_v61  ;;  %v545_v43 = vmul.f32 0.015625, %v1163_v50 }
  0xa0   :  { %v153_v47 = vadd.f32 %v137_v48, %v105_v5  ;;  %v271_v29 = vpop.permute.xlu2 %270  ;;  %v196_v5 = vadd.f32 %v188_v34, %v172_v62  ;;  %v191_v48 = vmul.f32 0.140625, %v872_v58  ;;  %v311_v62 = vmul.f32 0.046875, %v924_v22 }
  0xa1   :  { %v335_v58 = vmul.f32 0.140625, %v1000_v1  ;;  %v307_v22 = vmul.f32 0.046875, %v908_v11  ;;  %v334_v11 = vmul.f32 0.140625, %v981_v53  ;;  %v478_v53 = vmul.f32 0.046875, %v1139_v27 }
  0xa2   :  { %v177_v54 = vadd.f32 %v169_v9, %v153_v47  ;;  %v332_v47 = vmul.f32 0.140625, %v975_v52  ;;  %v330_v27 = vmul.f32 0.140625, %v947_v35 }
  0xa4   :  { %v201_v61 = vadd.f32 %v193_v19, %v177_v54  ;;  %564 = vrot.lane.b32.xlu1 %v543_v42, %s643_s21 }
  0xa5   :  { %562 = vrot.lane.b32.xlu0 %v542_v41, %s643_s21 }
  0xa6   :  { %v249_v59 = vadd.f32 %v233_v46, %v201_v61  ;;  %566 = vrot.lane.b32.xlu2 %v544_v30, %s643_s21  ;;  %v225_v57 = vpop.permute.xlu1 %224  ;;  %v175_v46 = vadd.f32 %v167_v63, %v151_v38 }
  0xa7   :  { %v223_v28 = vpop.permute.xlu0 %222  ;;  %v1166_v32 = vadd.f32 %v225_v57, %v197_v60 }
  0xa8   :  { %v244_v49 = vadd.f32 %v223_v28, %v196_v5  ;;  %v277_v9 = vpop.permute.xlu2 %276  ;;  %v199_v42 = vadd.f32 %v191_v48, %v175_v46  ;;  %v331_v46 = vmul.f32 0.140625, %v958_v40 }
  0xaa   :  { %v292_v36 = vadd.f32 %v271_v29, %v244_v49 }
  0xac   :  { %v316_v19 = vadd.f32 %v308_v33, %v292_v36  ;;  %v310_v36 = vmul.f32 0.046875, %v929_v23 }
  0xad   :  { %568 = vrot.lane.b32.xlu0 %v545_v43, %s643_s21  ;;  %s599_s21 = sshll.u32 %s644_s3, 4  ;;  %s600_s21 = int_to_ptr.vmem [resolvable:$true] %s599_s21 }
  0xae   :  { %v1173_v41 = vadd.f32 %v332_v47, %v316_v19  ;;  %v231_v55 = vpop.permute.xlu1 %230 }
  0xaf   :  { %v229_v34 = vpop.permute.xlu0 %228  ;;  %v1176_v13 = vadd.f32 %v231_v55, %v1085_v8 }
  0xb0   :  { %v247_v10 = vadd.f32 %v229_v34, %v199_v42  ;;  %v1179_v38 = vpop.permute.xlu2 %362 }
  0xb2   :  { %v295_v29 = vadd.f32 %v277_v9, %v247_v10 }
  0xb4   :  { %v319_v52 = vadd.f32 %v311_v62, %v295_v29  ;;  %v313_v62 = vmul.f32 0.046875, %v952_v39 }
  0xb6   :  { %v1182_v54 = vadd.f32 %v335_v58, %v319_v52  ;;  %v269_v30 = vpop.permute.xlu1 %268 }
  0xb7   :  { %v267_v61 = vpop.permute.xlu0 %266  ;;  %v291_v63 = vadd.f32 %v269_v30, %v1102_v18  ;;  %v454_v30 = vmul.f32 0.015625, %v1051_v26  ;;  %v457_v26 = vmul.f32 0.015625, %v1077_v14 }
  0xb8   :  { %v1185_v60 = vpop.permute.xlu2 %368 }
  0xb9   :  { %v315_v43 = vadd.f32 %v307_v22, %v291_v63 }
  0xbb   :  { %v339_v48 = vadd.f32 %v331_v46, %v315_v43  ;;  %v306_v43 = vmul.f32 0.046875, %v893_v3  ;;  %v290_v46 = vadd.f32 %v267_v61, %v1148_v44  ;;  %v309_v3 = vmul.f32 0.046875, %v914_v15 }
  0xbe   :  { %v275_v5 = vpop.permute.xlu1 %274 }
  0xbf   :  { %v273_v8 = vpop.permute.xlu0 %272  ;;  %v294_v57 = vadd.f32 %v275_v5, %v246_v56  ;;  %v451_v56 = vmul.f32 0.015625, %v1022_v6 }
  0xc0   :  { %v1187_v28 = vpop.permute.xlu2 %374  ;;  %v293_v44 = vadd.f32 %v273_v8, %v1166_v32  ;;  %v474_v32 = vmul.f32 0.046875, %v1090_v24 }
  0xc1   :  { %v318_v55 = vadd.f32 %v310_v36, %v294_v57  ;;  %v337_v57 = vmul.f32 0.140625, %v1007_v21  ;;  %v481_v21 = vmul.f32 0.046875, %v1163_v50  ;;  %v333_v50 = vmul.f32 0.140625, %v970_v51 }
  0xc2   :  { %v453_v51 = vmul.f32 0.015625, %v1056_v45 }
  0xc3   :  { %v342_v40 = vadd.f32 %v334_v11, %v318_v55  ;;  %v317_v11 = vadd.f32 %v309_v3, %v293_v44 }
  0xc6   :  { %v281_v49 = vpop.permute.xlu1 %280 }
  0xc7   :  { %v279_v33 = vpop.permute.xlu0 %278  ;;  %v297_v9 = vadd.f32 %v281_v49, %v249_v59  ;;  %v475_v59 = vmul.f32 0.046875, %v1113_v12 }
  0xc8   :  { %v413_v1 = vpop.permute.xlu2 %412 }
  0xc9   :  { %v321_v63 = vadd.f32 %v313_v62, %v297_v9 }
  0xcb   :  { %v345_v22 = vadd.f32 %v337_v57, %v321_v63 }
  0xce   :  { %v1192_v18 = vpop.permute.xlu1 %366 }
  0xcf   :  { %v365_v47 = vpop.permute.xlu0 %364 }
  0xd0   :  { %v387_v19 = vadd.f32 %v365_v47, %v339_v48  ;;  %v419_v42 = vpop.permute.xlu2 %418  ;;  %v314_v47 = vadd.f32 %v306_v43, %v290_v46  ;;  %v388_v43 = vadd.f32 %v1192_v18, %v1173_v41 }
  0xd2   :  { %v435_v34 = vadd.f32 %v413_v1, %v387_v19 }
  0xd4   :  { %v459_v10 = vadd.f32 %v451_v56, %v435_v34  ;;  %v338_v34 = vadd.f32 %v330_v27, %v314_v47 }
  0xd6   :  { %v1198_v29 = vadd.f32 %v475_v59, %v459_v10  ;;  %v1200_v23 = vpop.permute.xlu1 %372  ;;  %v386_v14 = vadd.f32 %v1179_v38, %v338_v34  ;;  %v450_v59 = vmul.f32 0.015625, %v1027_v20 }
  0xd7   :  { %v371_v58 = vpop.permute.xlu0 %370  ;;  %v391_v41 = vadd.f32 %v1200_v23, %v1182_v54 }
  0xd8   :  { %v390_v52 = vadd.f32 %v371_v58, %v342_v40  ;;  %v425_v6 = vpop.permute.xlu2 %424  ;;  %v341_v40 = vadd.f32 %v333_v50, %v317_v11  ;;  %v312_v58 = vmul.f32 0.046875, %v935_v25 }
  0xda   :  { %v438_v5 = vadd.f32 %v419_v42, %v390_v52  ;;  %v296_v52 = vadd.f32 %v279_v33, %v1176_v13  ;;  %v477_v33 = vmul.f32 0.046875, %v1119_v31 }
  0xdc   :  { %v462_v12 = vadd.f32 %v454_v30, %v438_v5  ;;  %v389_v30 = vadd.f32 %v1185_v60, %v341_v40  ;;  %v320_v38 = vadd.f32 %v312_v58, %v296_v52 }
  0xde   :  { %v1205_v49 = vadd.f32 %v478_v53, %v462_v12  ;;  %v411_v39 = vpop.permute.xlu1 %410 }
  0xdf   :  { %v377_v1 = vpop.permute.xlu0 %376  ;;  %v434_v35 = vadd.f32 %v411_v39, %v386_v14 }
  0xe0   :  { %v393_v36 = vadd.f32 %v377_v1, %v345_v22  ;;  %v1210_v48 = vpop.permute.xlu2 %510 }
  0xe1   :  { %v458_v15 = vadd.f32 %v450_v59, %v434_v35 }
  0xe2   :  { %v441_v9 = vadd.f32 %v425_v6, %v393_v36  ;;  %v336_v6 = vmul.f32 0.140625, %v995_v0  ;;  %v456_v0 = vmul.f32 0.015625, %v1082_v2  ;;  %v452_v36 = vmul.f32 0.015625, %v1035_v4 }
  0xe3   :  { %v482_v63 = vadd.f32 %v474_v32, %v458_v15  ;;  %v476_v2 = vmul.f32 0.046875, %v1108_v17  ;;  %v455_v4 = vmul.f32 0.015625, %v1062_v7  ;;  %v479_v17 = vmul.f32 0.046875, %v1134_v16 }
  0xe4   :  { %v465_v19 = vadd.f32 %v457_v26, %v441_v9  ;;  %v344_v53 = vadd.f32 %v336_v6, %v320_v38 }
  0xe6   :  { %v1214_v56 = vadd.f32 %v481_v21, %v465_v19  ;;  %v417_v42 = vpop.permute.xlu1 %416  ;;  %v392_v24 = vadd.f32 %v1187_v28, %v344_v53  ;;  %v480_v28 = vmul.f32 0.046875, %v1145_v37 }
  0xe7   :  { %v415_v55 = vpop.permute.xlu0 %414  ;;  %v437_v20 = vadd.f32 %v417_v42, %v389_v30 }
  0xe8   :  { %v1218_v61 = vpop.permute.xlu2 %516  ;;  %v436_v26 = vadd.f32 %v415_v55, %v388_v43 }
  0xe9   :  { %v461_v25 = vadd.f32 %v453_v51, %v437_v20 }
  0xea   :  { %v460_v21 = vadd.f32 %v452_v36, %v436_v26 }
  0xeb   :  { %v485_v45 = vadd.f32 %v477_v33, %v461_v25 }
  0xec   :  { %v484_v34 = vadd.f32 %v476_v2, %v460_v21 }
  0xee   :  { %v423_v10 = vpop.permute.xlu1 %422  ;;  %v532_v37 = vadd.f32 %v1210_v48, %v484_v34 }
  0xef   :  { %v421_v62 = vpop.permute.xlu0 %420  ;;  %v440_v22 = vadd.f32 %v423_v10, %v392_v24 }
  0xf0   :  { %v555_v8 = vpop.permute.xlu2 %554  ;;  %v439_v55 = vadd.f32 %v421_v62, %v391_v41 }
  0xf1   :  { %v464_v9 = vadd.f32 %v456_v0, %v440_v22 }
  0xf2   :  { %v463_v44 = vadd.f32 %v455_v4, %v439_v55 }
  0xf3   :  { %v488_v47 = vadd.f32 %v480_v28, %v464_v9 }
  0xf4   :  { %v487_v54 = vadd.f32 %v479_v17, %v463_v44 }
  0xf6   :  { %v509_v5 = vpop.permute.xlu1 %508  ;;  %v535_v7 = vadd.f32 %v1218_v61, %v487_v54 }
  0xf7   :  { %v507_v57 = vpop.permute.xlu0 %506  ;;  %v531_v14 = vadd.f32 %v509_v5, %v1198_v29 }
  0xf8   :  { %v530_v12 = vadd.f32 %v507_v57, %v482_v63  ;;  %v561_v60 = vpop.permute.xlu2 %560 }
  0xfa   :  { %v578_v13 = vadd.f32 %v555_v8, %v530_v12 }
  0xfc   :  { %587 = vst.msk [vmem:[#allocation2] sm:$0xff] %vm586_vm0, %v578_v13 }
  0xfe   :  { %v515_v39 = vpop.permute.xlu1 %514 }
  0xff   :  { %v513_v1 = vpop.permute.xlu0 %512  ;;  %v534_v23 = vadd.f32 %v515_v39, %v1205_v49 }
 0x100   :  { %v533_v46 = vadd.f32 %v513_v1, %v485_v45  ;;  %v567_v27 = vpop.permute.xlu2 %566 }
 0x102   :  { %v581_v31 = vadd.f32 %v561_v60, %v533_v46 }
 0x104   :  { %590 = vst.msk [vmem:[#allocation2 + $0x18] sm:$0xff] %vm586_vm0, %v581_v31 }
 0x106   :  { %v521_v19 = vpop.permute.xlu1 %520 }
 0x107   :  { %v519_v42 = vpop.permute.xlu0 %518  ;;  %v537_v16 = vadd.f32 %v521_v19, %v1214_v56 }
 0x108   :  { %v536_v18 = vadd.f32 %v519_v42, %v488_v47 }
 0x10a   :  { %v584_v3 = vadd.f32 %v567_v27, %v536_v18 }
 0x10c   :  { %593 = vst.msk [vmem:[#allocation2 + $0x30] sm:$0xff] %vm586_vm0, %v584_v3 }
 0x10e   :  { %v559_v11 = vpop.permute.xlu1 %558 }
 0x10f   :  { %v557_v50 = vpop.permute.xlu0 %556  ;;  %v580_v59 = vadd.f32 %v559_v11, %v532_v37 }
 0x110   :  { %v579_v35 = vadd.f32 %v557_v50, %v531_v14 }
 0x111   :  { %589 = vst.msk [vmem:[#allocation2 + $0x10] sm:$0xff] %vm586_vm0, %v580_v59 }
 0x112   :  { %588 = vst.msk [vmem:[#allocation2 + $0x8] sm:$0xff] %vm586_vm0, %v579_v35 }
 0x116   :  { %v565_v10 = vpop.permute.xlu1 %564 }
 0x117   :  { %v563_v48 = vpop.permute.xlu0 %562  ;;  %v583_v62 = vadd.f32 %v565_v10, %v535_v7 }
 0x118   :  { %v582_v40 = vadd.f32 %v563_v48, %v534_v23 }
 0x119   :  { %592 = vst.msk [vmem:[#allocation2 + $0x28] sm:$0xff] %vm586_vm0, %v583_v62 }
 0x11a   :  { %591 = vst.msk [vmem:[#allocation2 + $0x20] sm:$0xff] %vm586_vm0, %v582_v40 }
 0x11f   :  { %v569_v29 = vpop.permute.xlu0 %568 }
 0x120   :  { %v585_v49 = vadd.f32 %v569_v29, %v537_v16 }
 0x122   :  { %594 = vst.msk [vmem:[#allocation2 + $0x38] sm:$0xff] %vm586_vm0, %v585_v49 }
 0x123   :  { %607 = dma.vmem_to_hbm [thread:$0]  %s600_s21, 1024, %s602_s15, [#allocation3], %s645_s16, %s645_s16, %s646_s17  }
 0x124   :  { %641 = dma.done.wait [#allocation3], 1024  }
 0x125   :  { %642 = vsyncadd [#allocation3], 4294966272 }
 0x126   :  { %612 = vsyncpa [#allocation3], 1 }

</bundles_post_ra>
